<compile_context>
chip_gen: v6e
topology: v6e:2x2x1
jax: 0.10.0
libtpu: 0.0.40
codegen_flags: <defaults>
</compile_context>

<pallas_src>
import functools
import math

import jax
import jax.numpy as jnp
from jax.experimental import pallas as pl
from jax.experimental.pallas import tpu as pltpu

LANE = 128        # last-dim (lane) tiling unit
SUBLANE_BF16 = 16 # second-to-last-dim unit for bf16 (packed sublanes)


def _round_up(x, m):
    return (x + m - 1) // m * m


def _mlp_fused_kernel(*refs, num_layers):
    # refs = (x_ref, w0, b0, w1, b1, ..., w_{L-1}, b_{L-1}, o_ref)
    x_ref = refs[0]
    o_ref = refs[-1]
    wb = refs[1:-1]

    h = x_ref[...]                                   # [tm, K0_pad] bf16
    for i in range(num_layers):
        w = wb[2 * i][...]                           # [K_pad, N_pad] bf16 (pre-transposed)
        b = wb[2 * i + 1][...]                       # [1, N_pad] f32
        acc = jnp.dot(h, w, preferred_element_type=jnp.float32) + b   # f32 accumulation
        if i < num_layers - 1:
            acc = jnp.maximum(acc, 0.0)              # ReLU in f32
            h = acc.astype(w.dtype)                  # back to bf16 for next MXU pass
        else:
            h = acc
    o_ref[...] = h.astype(o_ref.dtype)


def init_mlp_params(key, input_dim, hidden_dim, output_dim, num_layers):
    """Deterministic synthetic parameters matching nn.Linear shapes (f32)."""
    h = [hidden_dim] * (num_layers - 1)
    in_dims = [input_dim] + h
    out_dims = h + [output_dim]
    params = []
    for n, k in zip(in_dims, out_dims):
        key, kw, kb = jax.random.split(key, 3)
        bound = 1.0 / jnp.sqrt(jnp.float32(n))
        w = jax.random.uniform(kw, (k, n), jnp.float32, -bound, bound)  # [out, in]
        b = jax.random.uniform(kb, (k,), jnp.float32, -bound, bound)    # [out]
        params.append((w, b))
    return params


def prepare_mlp_params(params, *, compute_dtype=jnp.bfloat16):
    """One-time prep: transpose each nn.Linear weight to [in, out], zero-pad both
    feature dims to multiples of 128 lanes, cast weights to bf16 (f32 bias)."""
    prepped = []
    for w, b in params:
        n_out, n_in = w.shape
        k_pad = _round_up(n_in, LANE)
        n_pad = _round_up(n_out, LANE)
        wt = (jnp.zeros((k_pad, n_pad), compute_dtype)
              .at[:n_in, :n_out].set(w.T.astype(compute_dtype)))
        bp = jnp.zeros((1, n_pad), jnp.float32).at[0, :n_out].set(b.astype(jnp.float32))
        prepped.append((wt, bp))
    return prepped


def mlp_forward(x, prepped_params, output_dim, *, tm=512):
    """x: [..., input_dim] -> [..., output_dim], matching MLP.forward.

    All leading dims are flattened into the row axis, so e.g. the whole
    TubeDETR bbox head over `hs` [n_dec_layers, b, t*queries, d] is ONE call.
    """
    lead_shape = x.shape[:-1]
    K = x.shape[-1]
    M = int(math.prod(lead_shape)) if lead_shape else 1

    num_layers = len(prepped_params)
    K_pad = prepped_params[0][0].shape[0]
    N_last_pad = prepped_params[-1][0].shape[1]
    cdtype = prepped_params[0][0].dtype   # bf16 compute dtype

    x2 = x.reshape(M, K).astype(cdtype)

    # Row tile: big (amortizes ~0.35us/grid-step overhead), multiple of 16
    # sublanes (bf16 packing), never larger than needed for M.
    tm_eff = min(_round_up(tm, SUBLANE_BF16), _round_up(max(M, 1), SUBLANE_BF16))
    # v7x megacore: guarantee >=2 balanced "parallel" steps when M is big
    # enough to be worth splitting (harmless on single-TC v5e/v6e).
    if pl.cdiv(M, tm_eff) == 1 and M >= 256:
        tm_eff = _round_up(pl.cdiv(M, 2), SUBLANE_BF16)
    grid = pl.cdiv(M, tm_eff)

    if K == K_pad and M >= tm_eff:
        # Common d_model case: no padded copy of x. Ragged trailing rows are
        # handled as a partial trailing block (OOB reads only feed output rows
        # whose writes Pallas masks off).
        x_in = x2
        out_rows = M
    else:
        # K tail must be explicit zeros (0 * garbage could be NaN); pad rows to
        # an exact multiple of the tile while we're at it (tiny M case anyway).
        out_rows = grid * tm_eff
        x_in = jnp.zeros((out_rows, K_pad), cdtype).at[:M, :K].set(x2)

    inputs = [x_in]
    in_specs = [pl.BlockSpec((tm_eff, K_pad), lambda i: (i, 0))]
    for wt, bp in prepped_params:
        inputs += [wt, bp]
        in_specs += [
            pl.BlockSpec(wt.shape, lambda i: (0, 0)),  # full weight, VMEM-resident
            pl.BlockSpec(bp.shape, lambda i: (0, 0)),  # full bias, VMEM-resident
        ]

    kernel = functools.partial(_mlp_fused_kernel, num_layers=num_layers)
    out_pad = pl.pallas_call(
        kernel,
        out_shape=jax.ShapeDtypeStruct((out_rows, N_last_pad), x.dtype),
        grid_spec=pl.GridSpec(
            grid=(grid,),
            in_specs=in_specs,
            out_specs=pl.BlockSpec((tm_eff, N_last_pad), lambda i: (i, 0)),
        ),
        compiler_params=pltpu.CompilerParams(
            dimension_semantics=("parallel",)),
    )(*inputs)

    out = out_pad[:M, :output_dim]
    return out.reshape(*lead_shape, output_dim)


def _reference(x, params, output_dim):
    """Plain-JAX f32 reference, same math as PyTorch MLP.forward."""
    lead_shape = x.shape[:-1]
    ref = x.reshape(-1, x.shape[-1])
    num_layers = len(params)
    for i, (w, b) in enumerate(params):
        ref = ref @ w.T + b
        if i < num_layers - 1:
            ref = jnp.maximum(ref, 0.0)
    return ref.reshape(*lead_shape, output_dim)


if __name__ == "__main__":
    key = jax.random.PRNGKey(0)
    TOL = dict(atol=5e-2, rtol=5e-2)   # bf16 inputs/weights, f32 accumulation

    # --- Case 1: whole bbox head batched into ONE call.
    # hs from the decoder: [n_dec_layers=6, b=2, t*queries=8, hidden=32] -> M=96.
    n_dec, batch, seq = 6, 2, 8
    input_dim, hidden_dim, output_dim, num_layers = 32, 32, 4, 3
    k_x, k_p, key = jax.random.split(key, 3)
    hs = jax.random.normal(k_x, (n_dec, batch, seq, input_dim), jnp.float32)
    params = init_mlp_params(k_p, input_dim, hidden_dim, output_dim, num_layers)
    prepped = prepare_mlp_params(params)

    out = jax.block_until_ready(mlp_forward(hs, prepped, output_dim))
    ref = _reference(hs, params, output_dim)
    assert out.shape == (n_dec, batch, seq, output_dim)
    assert jnp.allclose(out, ref, **TOL), "mismatch vs reference (case 1)"

    # --- Case 2: ragged small M (exercises padded path): M=18, K padded 32->128.
    b2, s2 = 2, 9
    k_x2, k_p2, key = jax.random.split(key, 3)
    x2 = jax.random.normal(k_x2, (b2, s2, input_dim), jnp.float32)
    params2 = init_mlp_params(k_p2, input_dim, hidden_dim, output_dim, num_layers)
    prepped2 = prepare_mlp_params(params2)
    out2 = jax.block_until_ready(mlp_forward(x2, prepped2, output_dim))
    ref2 = _reference(x2, params2, output_dim)
    assert out2.shape == (b2, s2, output_dim)
    assert jnp.allclose(out2, ref2, **TOL), "mismatch vs reference (case 2)"

    # --- Case 3: lane-aligned d_model (no padded copy of x), multi-step grid
    # with a ragged partial trailing block: [2, 300, 128] -> M=600, tm=512.
    b3, s3, d3 = 2, 300, 128
    k_x3, k_p3, key = jax.random.split(key, 3)
    x3 = jax.random.normal(k_x3, (b3, s3, d3), jnp.float32)
    params3 = init_mlp_params(k_p3, d3, d3, output_dim, num_layers)
    prepped3 = prepare_mlp_params(params3)
    out3 = jax.block_until_ready(mlp_forward(x3, prepped3, output_dim))
    ref3 = _reference(x3, params3, output_dim)
    assert out3.shape == (b3, s3, output_dim)
    assert jnp.allclose(out3, ref3, **TOL), "mismatch vs reference (case 3)"

    print("KERNEL_OK")
</pallas_src>

<mosaic_0001>
module attributes {stable_mosaic.version = 11 : i64} {
  func.func @_mlp_fused_kernel(%arg0: i32, %arg1: memref<96x128xbf16, #tpu.memory_space<vmem>>, %arg2: memref<128x128xbf16, #tpu.memory_space<vmem>>, %arg3: memref<1x128xf32, #tpu.memory_space<vmem>>, %arg4: memref<128x128xbf16, #tpu.memory_space<vmem>>, %arg5: memref<1x128xf32, #tpu.memory_space<vmem>>, %arg6: memref<128x128xbf16, #tpu.memory_space<vmem>>, %arg7: memref<1x128xf32, #tpu.memory_space<vmem>>, %arg8: memref<96x128xf32, #tpu.memory_space<vmem>>) attributes {dimension_semantics = [#tpu.dimension_semantics<parallel>], iteration_bounds = array<i64: 1>, scalar_prefetch = 0 : i64, scratch_operands = 0 : i64, tpu.core_type = #tpu.core_type<tc>, window_params = [{transform_indices = @transform_0, window_bounds = array<i64: 96, 128>}, {pipeline_mode = #tpu.pipeline_mode<synchronous>, transform_indices = @transform_1, window_bounds = array<i64: 128, 128>}, {pipeline_mode = #tpu.pipeline_mode<synchronous>, transform_indices = @transform_2, window_bounds = array<i64: 1, 128>}, {pipeline_mode = #tpu.pipeline_mode<synchronous>, transform_indices = @transform_3, window_bounds = array<i64: 128, 128>}, {pipeline_mode = #tpu.pipeline_mode<synchronous>, transform_indices = @transform_4, window_bounds = array<i64: 1, 128>}, {pipeline_mode = #tpu.pipeline_mode<synchronous>, transform_indices = @transform_5, window_bounds = array<i64: 128, 128>}, {pipeline_mode = #tpu.pipeline_mode<synchronous>, transform_indices = @transform_6, window_bounds = array<i64: 1, 128>}, {transform_indices = @transform_7, window_bounds = array<i64: 96, 128>}]} {
    %c0 = arith.constant 0 : index
    %c0_0 = arith.constant 0 : index
    %0 = vector.load %arg1[%c0, %c0_0] : memref<96x128xbf16, #tpu.memory_space<vmem>>, vector<96x128xbf16>
    %c0_1 = arith.constant 0 : index
    %c0_2 = arith.constant 0 : index
    %1 = vector.load %arg2[%c0_1, %c0_2] : memref<128x128xbf16, #tpu.memory_space<vmem>>, vector<128x128xbf16>
    %c0_3 = arith.constant 0 : index
    %c0_4 = arith.constant 0 : index
    %2 = vector.load %arg3[%c0_3, %c0_4] : memref<1x128xf32, #tpu.memory_space<vmem>>, vector<1x128xf32>
    %cst = arith.constant dense<0.000000e+00> : vector<96x128xf32>
    %3 = tpu.matmul %0, %1, %cst {dimension_numbers = #tpu.dot_dimension_numbers<[1], [0], [0], [1], [0, 0, 1, 1], [], []>} : vector<96x128xbf16>, vector<128x128xbf16>, vector<96x128xf32> -> vector<96x128xf32>
    %4 = vector.broadcast %2 : vector<1x128xf32> to vector<96x128xf32>
    %5 = arith.addf %3, %4 : vector<96x128xf32>
    %cst_5 = arith.constant 0.000000e+00 : f32
    %6 = vector.broadcast %cst_5 : f32 to vector<96x128xf32>
    %7 = arith.maximumf %5, %6 : vector<96x128xf32>
    %8 = arith.truncf %7 : vector<96x128xf32> to vector<96x128xbf16>
    %c0_6 = arith.constant 0 : index
    %c0_7 = arith.constant 0 : index
    %9 = vector.load %arg4[%c0_6, %c0_7] : memref<128x128xbf16, #tpu.memory_space<vmem>>, vector<128x128xbf16>
    %c0_8 = arith.constant 0 : index
    %c0_9 = arith.constant 0 : index
    %10 = vector.load %arg5[%c0_8, %c0_9] : memref<1x128xf32, #tpu.memory_space<vmem>>, vector<1x128xf32>
    %cst_10 = arith.constant dense<0.000000e+00> : vector<96x128xf32>
    %11 = tpu.matmul %8, %9, %cst_10 {dimension_numbers = #tpu.dot_dimension_numbers<[1], [0], [0], [1], [0, 0, 1, 1], [], []>} : vector<96x128xbf16>, vector<128x128xbf16>, vector<96x128xf32> -> vector<96x128xf32>
    %12 = vector.broadcast %10 : vector<1x128xf32> to vector<96x128xf32>
    %13 = arith.addf %11, %12 : vector<96x128xf32>
    %cst_11 = arith.constant 0.000000e+00 : f32
    %14 = vector.broadcast %cst_11 : f32 to vector<96x128xf32>
    %15 = arith.maximumf %13, %14 : vector<96x128xf32>
    %16 = arith.truncf %15 : vector<96x128xf32> to vector<96x128xbf16>
    %c0_12 = arith.constant 0 : index
    %c0_13 = arith.constant 0 : index
    %17 = vector.load %arg6[%c0_12, %c0_13] : memref<128x128xbf16, #tpu.memory_space<vmem>>, vector<128x128xbf16>
    %c0_14 = arith.constant 0 : index
    %c0_15 = arith.constant 0 : index
    %18 = vector.load %arg7[%c0_14, %c0_15] : memref<1x128xf32, #tpu.memory_space<vmem>>, vector<1x128xf32>
    %cst_16 = arith.constant dense<0.000000e+00> : vector<96x128xf32>
    %19 = tpu.matmul %16, %17, %cst_16 {dimension_numbers = #tpu.dot_dimension_numbers<[1], [0], [0], [1], [0, 0, 1, 1], [], []>} : vector<96x128xbf16>, vector<128x128xbf16>, vector<96x128xf32> -> vector<96x128xf32>
    %20 = vector.broadcast %18 : vector<1x128xf32> to vector<96x128xf32>
    %21 = arith.addf %19, %20 : vector<96x128xf32>
    %c0_17 = arith.constant 0 : index
    %c0_18 = arith.constant 0 : index
    %22 = vector.load %arg8[%c0_17, %c0_18] : memref<96x128xf32, #tpu.memory_space<vmem>>, vector<96x128xf32>
    tpu.vector_store %arg8[%c0_17, %c0_18], %21 {strides = array<i32>} : memref<96x128xf32, #tpu.memory_space<vmem>>, vector<96x128xf32>,
    return
  }
  func.func @transform_0(%arg0: i32) -> (i32, i32) {
    %c0_i32 = arith.constant 0 : i32
    %c0_i32_0 = arith.constant 0 : i32
    return %arg0, %c0_i32 : i32, i32
  }
  func.func @transform_1(%arg0: i32) -> (i32, i32) {
    %c0_i32 = arith.constant 0 : i32
    %c0_i32_0 = arith.constant 0 : i32
    %c0_i32_1 = arith.constant 0 : i32
    return %c0_i32, %c0_i32_0 : i32, i32
  }
  func.func @transform_2(%arg0: i32) -> (i32, i32) {
    %c0_i32 = arith.constant 0 : i32
    %c0_i32_0 = arith.constant 0 : i32
    %c0_i32_1 = arith.constant 0 : i32
    return %c0_i32, %c0_i32_0 : i32, i32
  }
  func.func @transform_3(%arg0: i32) -> (i32, i32) {
    %c0_i32 = arith.constant 0 : i32
    %c0_i32_0 = arith.constant 0 : i32
    %c0_i32_1 = arith.constant 0 : i32
    return %c0_i32, %c0_i32_0 : i32, i32
  }
  func.func @transform_4(%arg0: i32) -> (i32, i32) {
    %c0_i32 = arith.constant 0 : i32
    %c0_i32_0 = arith.constant 0 : i32
    %c0_i32_1 = arith.constant 0 : i32
    return %c0_i32, %c0_i32_0 : i32, i32
  }
  func.func @transform_5(%arg0: i32) -> (i32, i32) {
    %c0_i32 = arith.constant 0 : i32
    %c0_i32_0 = arith.constant 0 : i32
    %c0_i32_1 = arith.constant 0 : i32
    return %c0_i32, %c0_i32_0 : i32, i32
  }
  func.func @transform_6(%arg0: i32) -> (i32, i32) {
    %c0_i32 = arith.constant 0 : i32
    %c0_i32_0 = arith.constant 0 : i32
    %c0_i32_1 = arith.constant 0 : i32
    return %c0_i32, %c0_i32_0 : i32, i32
  }
  func.func @transform_7(%arg0: i32) -> (i32, i32) {
    %c0_i32 = arith.constant 0 : i32
    %c0_i32_0 = arith.constant 0 : i32
    return %arg0, %c0_i32 : i32, i32
  }
}

</mosaic_0001>

<bundles_post_ra>
// kernel: tpu_custom_call.1
= control target key start
LH: loop header
LB: loop body
LE: loop exit
PB: predicated region body
PF: predicated region fallthrough
CT: control target
= control target key end

     0   :  { %12 = vsyncpa [#allocation3], 0  ;;  %s1061_s0 = inlined_call_operand.hbm [shape: bf16[96,128], index: 0, kind: input, shape index: {}]   ;;  %s1062_s1 = inlined_call_operand.hbm [shape: bf16[128,128], index: 1, kind: input, shape index: {}]   ;;  %s1063_s2 = inlined_call_operand.vmem [shape: f32[1,128], index: 2, kind: input, shape index: {}]   ;;  %s1064_s3 = inlined_call_operand.hbm [shape: bf16[128,128], index: 3, kind: input, shape index: {}]   ;;  %s1065_s4 = inlined_call_operand.vmem [shape: f32[1,128], index: 4, kind: input, shape index: {}]   ;;  %s1066_s5 = inlined_call_operand.hbm [shape: bf16[128,128], index: 5, kind: input, shape index: {}]   ;;  %s1067_s6 = inlined_call_operand.vmem [shape: f32[1,128], index: 6, kind: input, shape index: {}]   ;;  %s1068_s7 = inlined_call_operand.hbm [shape: f32[96,128], index: 7, kind: output, shape index: {}]  }
   0x1   :  { %13 = vsyncpa [#allocation6], 0 }
   0x2   :  { %14 = vsyncpa [#allocation9], 0 }
   0x3   :  { %15 = vsyncpa [#allocation4], 0  ;;  %s976_s24 = smov [#allocation5]   ;;  %s977_s26 = smov [#allocation2]  }
   0x4   :  { %s33_s25 = sshll.u32 %s976_s24, 4  ;;  %s21_s27 = sshll.u32 %s977_s26, 4  ;;  %s34_s25 = int_to_ptr.vmem [resolvable:$true] %s33_s25  ;;  %s22_s27 = int_to_ptr.vmem [resolvable:$true] %s21_s27 }
   0x5   :  { %s876_s28 = scalar_lea.vmem %s34_s25, 1024  ;;  %p881_p1 = scmp.lt.s32.totalorder %s34_s25, %s34_s25 }
   0x6   :  { %p877_p0 = scmp.ne.s32.totalorder %s34_s25, %s876_s28  ;;  %p882_p2 = scmp.lt.s32.totalorder %s876_s28, %s876_s28 }
   0x8   :  { %p883_p3 = por %p882_p2, %p881_p1 }
   0xa   :  { %p884_p4 = pnand %p883_p3, %p877_p0 }
   0xc   :  { %887 = shalt.err (!%p884_p4)
}
   0xd   :  { %s978_s29 = smov 64   ;;  %s979_s30 = smov 4  }
   0xe   :  { %39 = dma.hbm_to_vmem [thread:$0]  %s1062_s1, 1024, %s34_s25, [#allocation6], %s978_s29, %s978_s29, %s979_s30  }
   0xf   :  { %s896_s10 = scalar_lea.vmem %s22_s27, 768  ;;  %p901_p6 = scmp.lt.s32.totalorder %s22_s27, %s22_s27 }
  0x10   :  { %p897_p5 = scmp.ne.s32.totalorder %s22_s27, %s896_s10  ;;  %p902_p7 = scmp.lt.s32.totalorder %s896_s10, %s896_s10 }
  0x12   :  { %p903_p8 = por %p902_p7, %p901_p6 }
  0x14   :  { %p904_p9 = pnand %p903_p8, %p897_p5 }
  0x16   :  { %907 = shalt.err (!%p904_p9)
}
  0x17   :  { %27 = dma.hbm_to_vmem [thread:$0]  %s1061_s0, 768, %s22_s27, [#allocation3], %s978_s29, %s978_s29, %s979_s30  }
  0x18   :  { %s980_s13 = smov [#allocation7]   ;;  %s981_s15 = smov [#allocation8]  }
  0x19   :  { %s47_s14 = sshll.u32 %s980_s13, 4  ;;  %s61_s16 = sshll.u32 %s981_s15, 4  ;;  %s48_s14 = int_to_ptr.vmem [resolvable:$true] %s47_s14  ;;  %s62_s16 = int_to_ptr.vmem [resolvable:$true] %s61_s16 }
  0x1a   :  { %s916_s1 = scalar_lea.vmem %s48_s14, 1024  ;;  %p921_p11 = scmp.lt.s32.totalorder %s48_s14, %s48_s14 }
  0x1b   :  { %p917_p10 = scmp.ne.s32.totalorder %s48_s14, %s916_s1  ;;  %p922_p12 = scmp.lt.s32.totalorder %s916_s1, %s916_s1 }
  0x1d   :  { %p923_p13 = por %p922_p12, %p921_p11 }
  0x1f   :  { %p924_p0 = pnand %p923_p13, %p917_p10 }
  0x21   :  { %927 = shalt.err (!%p924_p0)
}
  0x22   :  { %53 = dma.hbm_to_vmem [thread:$0]  %s1064_s3, 1024, %s48_s14, [#allocation6], %s978_s29, %s978_s29, %s979_s30  }
  0x23   :  { %s936_s0 = scalar_lea.vmem %s62_s16, 1024  ;;  %p941_p2 = scmp.lt.s32.totalorder %s62_s16, %s62_s16 }
  0x24   :  { %p937_p1 = scmp.ne.s32.totalorder %s62_s16, %s936_s0  ;;  %p942_p3 = scmp.lt.s32.totalorder %s936_s0, %s936_s0 }
  0x26   :  { %p943_p4 = por %p942_p3, %p941_p2 }
  0x28   :  { %p944_p5 = pnand %p943_p4, %p937_p1 }
  0x2a   :  { %947 = shalt.err (!%p944_p5)
}
  0x2b   :  { %67 = dma.hbm_to_vmem [thread:$0]  %s1066_s5, 1024, %s62_s16, [#allocation9], %s978_s29, %s978_s29, %s979_s30  }
  0x2c   :  { %968 = dma.done.wait [#allocation3], 768  }
  0x2d   :  { %969 = vsyncadd [#allocation3], 4294966528 }
  0x2e   :  { %970 = dma.done.wait [#allocation6], 2048  }
  0x2f   :  { %971 = vsyncadd [#allocation6], 4294965248 }
  0x30   :  { %972 = dma.done.wait [#allocation9], 1024  }
  0x31   :  { %973 = vsyncadd [#allocation9], 4294966272  ;;  %v838_v0 = vld [vmem:[#allocation5 + $0x38] sm:$0xff]   ;;  %v839_v1 = vld [vmem:[#allocation5 + $0x30] sm:$0xff]  }
  0x32   :  { %729 = vmatprep.subr.bf16.mxu0 %v838_v0  ;;  %v840_v2 = vld [vmem:[#allocation5 + $0x28] sm:$0xff]   ;;  %v841_v3 = vld [vmem:[#allocation5 + $0x20] sm:$0xff]   ;;  %v846_v4 = vld [vmem:[#allocation2] sm:$0xff]  }
  0x33   :  { %730 = vmatpush3.bf16.msra.mxu0 %v838_v0  ;;  %745 = vmatprep.mubr.bf16.mxu0 %v846_v4  ;;  %v842_v5 = vld [vmem:[#allocation5 + $0x18] sm:$0xff]   ;;  %v853_v7 = vld [vmem:[#allocation7 + $0x30] sm:$0xff]   ;;  %v844_v9 = vld [vmem:[#allocation5 + $0x8] sm:$0xff]  }
  0x34   :  { %731 = vmatprep.subr.bf16.mxu0 %v839_v1  ;;  %v852_v6 = vld [vmem:[#allocation7 + $0x38] sm:$0xff]   ;;  %v843_v8 = vld [vmem:[#allocation5 + $0x10] sm:$0xff]   ;;  %v854_v10 = vld [vmem:[#allocation7 + $0x28] sm:$0xff]  }
  0x35   :  { %757 = vmatprep.subr.bf16.mxu1 %v852_v6  ;;  %v855_v11 = vld [vmem:[#allocation7 + $0x20] sm:$0xff]   ;;  %v856_v13 = vld [vmem:[#allocation7 + $0x18] sm:$0xff]   ;;  %v849_v16 = vld [vmem:[#allocation2 + $0x18] sm:$0xff]  }
  0x36   :  { %758 = vmatpush3.bf16.msra.mxu1 %v852_v6  ;;  %v845_v12 = vld [vmem:[#allocation5] sm:$0xff]   ;;  %v847_v14 = vld [vmem:[#allocation2 + $0x8] sm:$0xff]   ;;  %v850_v17 = vld [vmem:[#allocation2 + $0x20] sm:$0xff]  }
  0x37   :  { %732 = vmatpush3.bf16.msra.mxu0 %v839_v1  ;;  %759 = vmatprep.subr.bf16.mxu1 %v853_v7  ;;  %v848_v15 = vld [vmem:[#allocation2 + $0x10] sm:$0xff]   ;;  %v851_v18 = vld [vmem:[#allocation2 + $0x28] sm:$0xff]   ;;  %v857_v19 = vld [vmem:[#allocation7 + $0x10] sm:$0xff]  }
  0x38   :  { %733 = vmatprep.subr.bf16.mxu0 %v840_v2  ;;  %v858_v20 = vld [vmem:[#allocation7 + $0x8] sm:$0xff]   ;;  %v859_v21 = vld [vmem:[#allocation7] sm:$0xff]   ;;  %v860_v22 = vld [vmem:[#allocation8 + $0x38] sm:$0xff]  }
  0x39   :  { %v861_v23 = vld [vmem:[#allocation8 + $0x30] sm:$0xff]   ;;  %v862_v24 = vld [vmem:[#allocation8 + $0x28] sm:$0xff]   ;;  %v863_v25 = vld [vmem:[#allocation8 + $0x20] sm:$0xff]  }
  0x3a   :  { %760 = vmatpush3.bf16.msra.mxu1 %v853_v7  ;;  %v864_v26 = vld [vmem:[#allocation8 + $0x18] sm:$0xff]   ;;  %v654_v29 = vld [vmem:[%s1063_s2] ss:$0 sm:$0xff]  ;;  %v866_v7 = vld [vmem:[#allocation8 + $0x8] sm:$0xff]  }
  0x3b   :  { %734 = vmatpush3.bf16.msra.mxu0 %v840_v2  ;;  %761 = vmatprep.subr.bf16.mxu1 %v854_v10  ;;  %v865_v6 = vld [vmem:[#allocation8 + $0x10] sm:$0xff]  }
  0x3c   :  { %735 = vmatprep.subr.bf16.mxu0 %v841_v3 }
  0x3e   :  { %762 = vmatpush3.bf16.msra.mxu1 %v854_v10 }
  0x3f   :  { %736 = vmatpush3.bf16.msra.mxu0 %v841_v3  ;;  %763 = vmatprep.subr.bf16.mxu1 %v855_v11 }
  0x40   :  { %737 = vmatprep.subr.bf16.mxu0 %v842_v5 }
  0x42   :  { %764 = vmatpush3.bf16.msra.mxu1 %v855_v11  ;;  %v669_v11 = vld [vmem:[%s1065_s4] ss:$0 sm:$0xff] }
  0x43   :  { %738 = vmatpush3.bf16.msra.mxu0 %v842_v5  ;;  %765 = vmatprep.subr.bf16.mxu1 %v856_v13 }
  0x44   :  { %739 = vmatprep.subr.bf16.mxu0 %v843_v8 }
  0x46   :  { %766 = vmatpush3.bf16.msra.mxu1 %v856_v13 }
  0x47   :  { %740 = vmatpush3.bf16.msra.mxu0 %v843_v8  ;;  %767 = vmatprep.subr.bf16.mxu1 %v857_v19  ;;  %v867_v8 = vld [vmem:[#allocation8] sm:$0xff]  }
  0x48   :  { %741 = vmatprep.subr.bf16.mxu0 %v844_v9 }
  0x4a   :  { %768 = vmatpush3.bf16.msra.mxu1 %v857_v19 }
  0x4b   :  { %742 = vmatpush3.bf16.msra.mxu0 %v844_v9  ;;  %769 = vmatprep.subr.bf16.mxu1 %v858_v20 }
  0x4c   :  { %743 = vmatprep.subr.bf16.mxu0 %v845_v12 }
  0x4e   :  { %770 = vmatpush3.bf16.msra.mxu1 %v858_v20 }
  0x4f   :  { %744 = vmatpush3.bf16.msra.mxu0 %v845_v12  ;;  %771 = vmatprep.subr.bf16.mxu1 %v859_v21 }
  0x50   :  { %785 = vmatprep.subr.bf16.mxu0 %v860_v22 }
  0x52   :  { %746 = vmatmul.mubr.bf16.vlgmr.msra.gmra.mxu0 %v847_v14  ;;  %772 = vmatpush3.bf16.msra.mxu1 %v859_v21 }
  0x53   :  { %749 = vmatprep.mubr.bf16.mxu0 %v848_v15  ;;  %813 = vmatprep.subr.bf16.mxu1 %v860_v22 }
  0x54   :  { %786 = vmatpush3.bf16.msra.mxu0 %v860_v22 }
  0x55   :  { %787 = vmatprep.subr.bf16.mxu0 %v861_v23 }
  0x58   :  { %788 = vmatpush3.bf16.msra.mxu0 %v861_v23 }
  0x59   :  { %789 = vmatprep.subr.bf16.mxu0 %v862_v24 }
  0x5a   :  { %750 = vmatmul.mubr.bf16.gmra.mxu0 %v849_v16 }
  0x5b   :  { %753 = vmatprep.mubr.bf16.mxu0 %v850_v17 }
  0x5c   :  { %790 = vmatpush3.bf16.msra.mxu0 %v862_v24 }
  0x5d   :  { %791 = vmatprep.subr.bf16.mxu0 %v863_v25 }
  0x60   :  { %792 = vmatpush3.bf16.msra.mxu0 %v863_v25 }
  0x61   :  { %793 = vmatprep.subr.bf16.mxu0 %v864_v26 }
  0x62   :  { %754 = vmatmul.mubr.bf16.gmra.mxu0 %v851_v18 }
  0x64   :  { %794 = vmatpush3.bf16.msra.mxu0 %v864_v26 }
  0x65   :  { %795 = vmatprep.subr.bf16.mxu0 %v865_v6 }
  0x68   :  { %796 = vmatpush3.bf16.msra.mxu0 %v865_v6 }
  0x69   :  { %797 = vmatprep.subr.bf16.mxu0 %v866_v7 }
  0x6c   :  { %798 = vmatpush3.bf16.msra.mxu0 %v866_v7 }
  0x6d   :  { %799 = vmatprep.subr.bf16.mxu0 %v867_v8 }
  0x70   :  { %800 = vmatpush3.bf16.msra.mxu0 %v867_v8 }
 0x112   :  { %v747_v27 = vpop.f32.mrf.mxu0 }
 0x113   :  { %v245_v33 = vadd.f32 %v747_v27, %v654_v29 }
 0x114   :  { %v236_v28 = vpop.f32.mrf.mxu0 }
 0x115   :  { %v237_v31 = vadd.f32 %v654_v29, %v236_v28  ;;  %v285_v40 = vmax.f32 %v245_v33, 0.0 }
 0x116   :  { %v748_v30 = vpop.f32.mrf.mxu0 }
 0x117   :  { %v248_v32 = vadd.f32 %v748_v30, %v654_v29  ;;  %v283_v38 = vmax.f32 %v237_v31, 0.0 }
 0x118   :  { %v239_v34 = vpop.f32.mrf.mxu0 }
 0x119   :  { %v240_v35 = vadd.f32 %v654_v29, %v239_v34  ;;  %v286_v36 = vmax.f32 %v248_v32, 0.0 }
 0x11a   :  { %v751_v37 = vpop.f32.mrf.mxu0 }
 0x11b   :  { %v284_v39 = vmax.f32 %v240_v35, 0.0  ;;  %v296_v43 = vpack.c.bf16 %v286_v36, %v285_v40  ;;  %v261_v47 = vadd.f32 %v751_v37, %v654_v29 }
 0x11c   :  { %v252_v41 = vpop.f32.mrf.mxu0 }
 0x11d   :  { %v295_v42 = vpack.c.bf16 %v284_v39, %v283_v38  ;;  %v253_v45 = vadd.f32 %v654_v29, %v252_v41  ;;  %v289_v54 = vmax.f32 %v261_v47, 0.0 }
 0x11e   :  { %v752_v44 = vpop.f32.mrf.mxu0 }
 0x11f   :  { %v264_v46 = vadd.f32 %v752_v44, %v654_v29  ;;  %773 = vmatprep.mubr.bf16.mxu1 %v295_v42  ;;  %v287_v52 = vmax.f32 %v253_v45, 0.0 }
 0x120   :  { %v255_v48 = vpop.f32.mrf.mxu0  ;;  %774 = vmatmul.mubr.bf16.vlgmr.msra.gmra.mxu1 %v296_v43 }
 0x121   :  { %v256_v49 = vadd.f32 %v654_v29, %v255_v48  ;;  %821 = vmatpush3.bf16.msra.mxu1 %v860_v22  ;;  %v290_v50 = vmax.f32 %v264_v46, 0.0 }
 0x122   :  { %v755_v51 = vpop.f32.mrf.mxu0  ;;  %814 = vmatprep.subr.bf16.mxu1 %v861_v23 }
 0x123   :  { %v288_v53 = vmax.f32 %v256_v49, 0.0  ;;  %v298_v57 = vpack.c.bf16 %v290_v50, %v289_v54  ;;  %v277_v61 = vadd.f32 %v755_v51, %v654_v29 }
 0x124   :  { %v268_v55 = vpop.f32.mrf.mxu0 }
 0x125   :  { %v297_v56 = vpack.c.bf16 %v288_v53, %v287_v52  ;;  %822 = vmatpush3.bf16.msra.mxu1 %v861_v23  ;;  %v269_v59 = vadd.f32 %v654_v29, %v268_v55  ;;  %v293_v3 = vmax.f32 %v277_v61, 0.0  ;;  %v678_v52 = vld [vmem:[%s1067_s6] ss:$0 sm:$0xff]  ;;  %s982_s6 = smov [#allocation10]  }
 0x126   :  { %v756_v58 = vpop.f32.mrf.mxu0  ;;  %815 = vmatprep.subr.bf16.mxu1 %v862_v24  ;;  %s640_s23 = sshll.u32 %s982_s6, 4  ;;  %s641_s23 = int_to_ptr.vmem [resolvable:$true] %s640_s23 }
 0x127   :  { %v280_v60 = vadd.f32 %v756_v58, %v654_v29  ;;  %777 = vmatprep.mubr.bf16.mxu1 %v297_v56  ;;  %v291_v1 = vmax.f32 %v269_v59, 0.0  ;;  %s948_s24 = scalar_lea.vmem %s641_s23, 1536  ;;  %p953_p7 = scmp.lt.s32.totalorder %s641_s23, %s641_s23 }
 0x128   :  { %v271_v62 = vpop.f32.mrf.mxu0  ;;  %778 = vmatmul.mubr.bf16.gmra.mxu1 %v298_v57  ;;  %p949_p6 = scmp.ne.s32.totalorder %s641_s23, %s948_s24  ;;  %p954_p8 = scmp.lt.s32.totalorder %s948_s24, %s948_s24 }
 0x129   :  { %v272_v63 = vadd.f32 %v654_v29, %v271_v62  ;;  %823 = vmatpush3.bf16.msra.mxu1 %v862_v24  ;;  %v294_v0 = vmax.f32 %v280_v60, 0.0 }
 0x12a   :  { %816 = vmatprep.subr.bf16.mxu1 %v863_v25  ;;  %p955_p9 = por %p954_p8, %p953_p7 }
 0x12b   :  { %v292_v2 = vmax.f32 %v272_v63, 0.0  ;;  %v300_v5 = vpack.c.bf16 %v294_v0, %v293_v3 }
 0x12c   :  { %p956_p10 = pnand %p955_p9, %p949_p6 }
 0x12d   :  { %v299_v4 = vpack.c.bf16 %v292_v2, %v291_v1  ;;  %824 = vmatpush3.bf16.msra.mxu1 %v863_v25 }
 0x12e   :  { %817 = vmatprep.subr.bf16.mxu1 %v864_v26 }
 0x12f   :  { %781 = vmatprep.mubr.bf16.mxu1 %v299_v4 }
 0x130   :  { %782 = vmatmul.mubr.bf16.gmra.mxu1 %v300_v5 }
 0x131   :  { %825 = vmatpush3.bf16.msra.mxu1 %v864_v26 }
 0x132   :  { %818 = vmatprep.subr.bf16.mxu1 %v865_v6 }
 0x135   :  { %826 = vmatpush3.bf16.msra.mxu1 %v865_v6 }
 0x136   :  { %819 = vmatprep.subr.bf16.mxu1 %v866_v7 }
 0x139   :  { %827 = vmatpush3.bf16.msra.mxu1 %v866_v7 }
 0x13a   :  { %820 = vmatprep.subr.bf16.mxu1 %v867_v8 }
 0x13d   :  { %828 = vmatpush3.bf16.msra.mxu1 %v867_v8 }
 0x1e0   :  { %v775_v9 = vpop.f32.mrf.mxu1 }
 0x1e1   :  { %v415_v15 = vadd.f32 %v775_v9, %v669_v11 }
 0x1e2   :  { %v406_v10 = vpop.f32.mrf.mxu1 }
 0x1e3   :  { %v407_v13 = vadd.f32 %v669_v11, %v406_v10  ;;  %v455_v22 = vmax.f32 %v415_v15, 0.0 }
 0x1e4   :  { %v776_v12 = vpop.f32.mrf.mxu1 }
 0x1e5   :  { %v418_v14 = vadd.f32 %v776_v12, %v669_v11  ;;  %v453_v20 = vmax.f32 %v407_v13, 0.0 }
 0x1e6   :  { %v409_v16 = vpop.f32.mrf.mxu1 }
 0x1e7   :  { %v410_v17 = vadd.f32 %v669_v11, %v409_v16  ;;  %v456_v18 = vmax.f32 %v418_v14, 0.0 }
 0x1e8   :  { %v779_v19 = vpop.f32.mrf.mxu1 }
 0x1e9   :  { %v454_v21 = vmax.f32 %v410_v17, 0.0  ;;  %v466_v25 = vpack.c.bf16 %v456_v18, %v455_v22  ;;  %v431_v29 = vadd.f32 %v779_v19, %v669_v11 }
 0x1ea   :  { %v422_v23 = vpop.f32.mrf.mxu1 }
 0x1eb   :  { %v465_v24 = vpack.c.bf16 %v454_v21, %v453_v20  ;;  %v423_v27 = vadd.f32 %v669_v11, %v422_v23  ;;  %v459_v36 = vmax.f32 %v431_v29, 0.0 }
 0x1ec   :  { %v780_v26 = vpop.f32.mrf.mxu1 }
 0x1ed   :  { %v434_v28 = vadd.f32 %v780_v26, %v669_v11  ;;  %801 = vmatprep.mubr.bf16.mxu0 %v465_v24  ;;  %v457_v34 = vmax.f32 %v423_v27, 0.0 }
 0x1ee   :  { %v425_v30 = vpop.f32.mrf.mxu1  ;;  %802 = vmatmul.mubr.bf16.vlgmr.msra.gmra.mxu0 %v466_v25 }
 0x1ef   :  { %v426_v31 = vadd.f32 %v669_v11, %v425_v30  ;;  %v460_v32 = vmax.f32 %v434_v28, 0.0 }
 0x1f0   :  { %v783_v33 = vpop.f32.mrf.mxu1 }
 0x1f1   :  { %v458_v35 = vmax.f32 %v426_v31, 0.0  ;;  %v468_v39 = vpack.c.bf16 %v460_v32, %v459_v36  ;;  %v447_v43 = vadd.f32 %v783_v33, %v669_v11 }
 0x1f2   :  { %v438_v37 = vpop.f32.mrf.mxu1 }
 0x1f3   :  { %v467_v38 = vpack.c.bf16 %v458_v35, %v457_v34  ;;  %v439_v41 = vadd.f32 %v669_v11, %v438_v37  ;;  %v463_v49 = vmax.f32 %v447_v43, 0.0 }
 0x1f4   :  { %v784_v40 = vpop.f32.mrf.mxu1 }
 0x1f5   :  { %v450_v42 = vadd.f32 %v784_v40, %v669_v11  ;;  %805 = vmatprep.mubr.bf16.mxu1 %v467_v38  ;;  %v461_v47 = vmax.f32 %v439_v41, 0.0 }
 0x1f6   :  { %v441_v44 = vpop.f32.mrf.mxu1  ;;  %806 = vmatmul.mubr.bf16.vlgmr.msra.gmra.mxu1 %v468_v39 }
 0x1f7   :  { %v442_v45 = vadd.f32 %v669_v11, %v441_v44  ;;  %v464_v46 = vmax.f32 %v450_v42, 0.0 }
 0x1f9   :  { %v462_v48 = vmax.f32 %v442_v45, 0.0  ;;  %v470_v51 = vpack.c.bf16 %v464_v46, %v463_v49 }
 0x1fb   :  { %v469_v50 = vpack.c.bf16 %v462_v48, %v461_v47 }
 0x1fd   :  { %809 = vmatprep.mubr.bf16.mxu1 %v469_v50 }
 0x1fe   :  { %810 = vmatmul.mubr.bf16.gmra.mxu1 %v470_v51 }
 0x2ae   :  { %v803_v53 = vpop.f32.mrf.mxu0 }
 0x2af   :  { %v585_v54 = vadd.f32 %v803_v53, %v678_v52 }
 0x2b0   :  { %v576_v55 = vpop.f32.mrf.mxu0 }
 0x2b1   :  { %625 = vst [vmem:[#allocation10 + $0x10] sm:$0xff] %v585_v54  ;;  %v577_v56 = vadd.f32 %v678_v52, %v576_v55 }
 0x2b2   :  { %v804_v57 = vpop.f32.mrf.mxu0 }
 0x2b3   :  { %623 = vst [vmem:[#allocation10] sm:$0xff] %v577_v56  ;;  %v588_v58 = vadd.f32 %v804_v57, %v678_v52 }
 0x2b4   :  { %v579_v59 = vpop.f32.mrf.mxu0 }
 0x2b5   :  { %626 = vst [vmem:[#allocation10 + $0x18] sm:$0xff] %v588_v58  ;;  %v580_v60 = vadd.f32 %v678_v52, %v579_v59 }
 0x2b6   :  { %v807_v61 = vpop.f32.mrf.mxu1 }
 0x2b7   :  { %624 = vst [vmem:[#allocation10 + $0x8] sm:$0xff] %v580_v60  ;;  %v601_v62 = vadd.f32 %v807_v61, %v678_v52 }
 0x2b8   :  { %v592_v63 = vpop.f32.mrf.mxu1 }
 0x2b9   :  { %629 = vst [vmem:[#allocation10 + $0x30] sm:$0xff] %v601_v62  ;;  %v593_v0 = vadd.f32 %v678_v52, %v592_v63 }
 0x2ba   :  { %v808_v1 = vpop.f32.mrf.mxu1 }
 0x2bb   :  { %627 = vst [vmem:[#allocation10 + $0x20] sm:$0xff] %v593_v0  ;;  %v604_v2 = vadd.f32 %v808_v1, %v678_v52 }
 0x2bc   :  { %v595_v3 = vpop.f32.mrf.mxu1 }
 0x2bd   :  { %630 = vst [vmem:[#allocation10 + $0x38] sm:$0xff] %v604_v2  ;;  %v596_v4 = vadd.f32 %v678_v52, %v595_v3 }
 0x2be   :  { %v811_v5 = vpop.f32.mrf.mxu1 }
 0x2bf   :  { %628 = vst [vmem:[#allocation10 + $0x28] sm:$0xff] %v596_v4  ;;  %v617_v6 = vadd.f32 %v811_v5, %v678_v52 }
 0x2c0   :  { %v608_v7 = vpop.f32.mrf.mxu1 }
 0x2c1   :  { %633 = vst [vmem:[#allocation10 + $0x50] sm:$0xff] %v617_v6  ;;  %v609_v8 = vadd.f32 %v678_v52, %v608_v7 }
 0x2c2   :  { %v812_v9 = vpop.f32.mrf.mxu1 }
 0x2c3   :  { %631 = vst [vmem:[#allocation10 + $0x40] sm:$0xff] %v609_v8  ;;  %v620_v10 = vadd.f32 %v812_v9, %v678_v52 }
 0x2c4   :  { %v611_v11 = vpop.f32.mrf.mxu1 }
 0x2c5   :  { %634 = vst [vmem:[#allocation10 + $0x58] sm:$0xff] %v620_v10  ;;  %v612_v12 = vadd.f32 %v678_v52, %v611_v11 }
 0x2c7   :  { %632 = vst [vmem:[#allocation10 + $0x48] sm:$0xff] %v612_v12 }
 0x2c8   :  { %959 = shalt.err (!%p956_p10)
}
 0x2c9   :  { %s983_s25 = smov 128   ;;  %s984_s26 = smov 8  }
 0x2ca   :  { %646 = dma.vmem_to_hbm [thread:$0]  %s641_s23, 1536, %s1068_s7, [#allocation4], %s983_s25, %s983_s25, %s984_s26  }
 0x2cb   :  { %974 = dma.done.wait [#allocation4], 1536  }
 0x2cc   :  { %975 = vsyncadd [#allocation4], 4294965760 }
 0x2cd   :  { %650 = vsyncpa [#allocation3], 1 }
 0x2ce   :  { %651 = vsyncpa [#allocation6], 1 }
 0x2cf   :  { %652 = vsyncpa [#allocation9], 1 }
 0x2d0   :  { %653 = vsyncpa [#allocation4], 1 }

</bundles_post_ra>
